<compile_context>
chip_gen: v7x
topology: tpu7x:2x2x1
jax: 0.10.0
libtpu: 0.0.40
codegen_flags: <defaults>
</compile_context>

<pallas_src>
import jax
import jax.numpy as jnp
from jax import lax
from jax.experimental import pallas as pl
from jax.experimental.pallas import tpu as pltpu


# --------------------------------------------------------------------------- #
# Kernel: one grid step == one (image, column-tile) slab.
# --------------------------------------------------------------------------- #
def _aspp_fused_kernel(xin_ref, w_ref, b1_ref, scale_ref, shift_ref, a_ref,
                       relu_out_ref, y_out_ref):
    """
    xin_ref      : (KIN, TC)   im2col(x) ++ y, channels-first (compute dtype)
    w_ref        : (COUT, KIN) fused weight [w1x @ atrous_w | w1y] (compute dtype)
    b1_ref       : (COUT, 1)   1x1-conv bias                        (f32)
    scale_ref    : (COUT, 1)   folded inference-BN scale            (f32)
    shift_ref    : (COUT, 1)   folded inference-BN shift            (f32)
    a_ref        : (1,)        PReLU shared slope (SMEM scalar)
    relu_out_ref : (COUT, TC)  relu(bn(z))
    y_out_ref    : (COUT, TC)  z
    """
    # Single fused MXU matmul, f32 accumulation.
    z = jnp.dot(w_ref[...], xin_ref[...], preferred_element_type=jnp.float32)
    z = z + b1_ref[...]                       # bias (lane-broadcast of a column)
    alpha = a_ref[0]                          # shared PReLU slope from SMEM
    z = jnp.where(z > 0, z, z * alpha)        # PReLU
    y_out_ref[...] = z.astype(y_out_ref.dtype)
    # Inference-mode BatchNorm folded to scale/shift, then ReLU.
    relu_out_ref[...] = jnp.maximum(z * scale_ref[...] + shift_ref[...],
                                    0.0).astype(relu_out_ref.dtype)


def _pick_col_tile(hw, kin, cout, in_bytes, out_bytes, budget):
    """Largest column tile whose double-buffered working set fits `budget`.

    Only 128-multiple divisors (lane-dense, unmasked stores) or the full row
    length (always a legal full-extent block) are considered.
    """
    fixed = cout * kin * in_bytes + 4 * cout * 4 + (64 << 10)

    def working_set(tc):
        # 2x for double-buffering: one input block + two output blocks, plus
        # the resident weight / bias / BN vectors.
        return fixed + 2 * tc * (kin * in_bytes + 2 * cout * out_bytes)

    if working_set(hw) <= budget:
        return hw
    for tc in range(hw - 1, 127, -1):
        if hw % tc == 0 and tc % 128 == 0 and working_set(tc) <= budget:
            return tc
    return hw   # no legal smaller tile; keep full-extent rows and raise vmem limit


def aspp_module2_forward(x_nchw, y_nchw, params, *, kernel_size, padding,
                         dilation, compute_dtype=jnp.bfloat16, out_dtype=None,
                         col_tile=None):
    if out_dtype is None:
        out_dtype = compute_dtype

    wa = params["atrous_w"]            # (COUT, CIN, K, K)  torch OIHW
    w1 = params["conv1_w"]             # (COUT, 2*COUT, 1, 1)
    b1 = params["conv1_b"]             # (COUT,)
    alpha = params["prelu_a"]          # scalar (shared PReLU slope)
    gamma, beta = params["bn_gamma"], params["bn_beta"]
    rmean, rvar, eps = params["bn_mean"], params["bn_var"], params["bn_eps"]

    N, CIN, H, W = x_nchw.shape
    CY = y_nchw.shape[1]
    COUT = wa.shape[0]
    K, D, P = kernel_size, dilation, padding

    OH = H + 2 * P - D * (K - 1)
    OW = W + 2 * P - D * (K - 1)
    # Holds when padding == dilation*(K-1)/2, as the PyTorch module intends.
    assert (OH, OW) == (y_nchw.shape[2], y_nchw.shape[3]), (
        "concat requires atrous output spatial dims to match y")

    KIN = K * K * CIN + CY
    KIN_PAD = (KIN + 7) // 8 * 8       # clean sublane tiles, minimal extra bytes
    HW = OH * OW
    in_bytes = jnp.dtype(compute_dtype).itemsize
    out_bytes = jnp.dtype(out_dtype).itemsize

    # ---- im2col, hoisted out of the kernel (XLA glue, in the compute dtype) --
    # TODO(synk): im2col could be moved inside the kernel (K*K shifted matmuls
    # on a DMA'd padded x tile) to remove this materialization entirely.
    xc = x_nchw.astype(compute_dtype)
    yc = y_nchw.astype(compute_dtype)
    xpad = jnp.pad(xc, ((0, 0), (0, 0), (P, P), (P, P)))
    taps = [xpad[:, :, kh * D:kh * D + OH, kw * D:kw * D + OW]
            for kh in range(K) for kw in range(K)]
    patches = jnp.stack(taps, axis=2)                      # (N, CIN, K*K, OH, OW)
    patches = patches.reshape(N, CIN * K * K, HW)
    parts = [patches, yc.reshape(N, CY, HW)]
    if KIN_PAD != KIN:
        parts.append(jnp.zeros((N, KIN_PAD - KIN, HW), compute_dtype))
    xin = jnp.concatenate(parts, axis=1)                   # (N, KIN_PAD, HW)

    # ---- fold atrous_conv into the x-branch of the 1x1 conv (f32, offline) ---
    w1_mat = w1[:, :, 0, 0].astype(jnp.float32)            # (COUT, 2*COUT)
    w1x, w1y = w1_mat[:, :COUT], w1_mat[:, COUT:]
    wx_fused = jnp.einsum("oa,ackl->ockl", w1x,
                          wa.astype(jnp.float32)).reshape(COUT, CIN * K * K)
    wparts = [wx_fused, w1y]
    if KIN_PAD != KIN:
        wparts.append(jnp.zeros((COUT, KIN_PAD - KIN), jnp.float32))
    w_comb = jnp.concatenate(wparts, axis=1).astype(compute_dtype)

    b1_col = b1.reshape(COUT, 1).astype(jnp.float32)
    inv_std = 1.0 / jnp.sqrt(rvar.astype(jnp.float32) + eps)
    scale = (gamma * inv_std).reshape(COUT, 1).astype(jnp.float32)
    shift = (beta - rmean * gamma * inv_std).reshape(COUT, 1).astype(jnp.float32)
    a_smem = jnp.asarray(alpha, jnp.float32).reshape(1)

    # ---- generation-aware VMEM budget & column tiling -------------------------
    try:
        vmem_cap = int(pltpu.get_tpu_info().vmem_capacity_bytes)
    except Exception:                       # not queryable -> assume v7x (64 MiB)
        vmem_cap = 64 << 20
    work_budget = min(int(vmem_cap * 0.6), 48 << 20)
    vmem_limit = max(32 << 20,
                     min(int(vmem_cap * 0.9), work_budget + (16 << 20)))

    if col_tile is None:
        col_tile = _pick_col_tile(HW, KIN_PAD, COUT, in_bytes, out_bytes,
                                  work_budget)
    assert HW % col_tile == 0
    grid = (N, HW // col_tile)

    total_cols = N * HW
    cost = pl.CostEstimate(
        flops=2 * COUT * KIN_PAD * total_cols,
        transcendentals=0,
        bytes_accessed=(KIN_PAD * total_cols * in_bytes
                        + COUT * KIN_PAD * in_bytes
                        + 2 * COUT * total_cols * out_bytes))

    out_relu, out_y = pl.pallas_call(
        _aspp_fused_kernel,
        out_shape=(jax.ShapeDtypeStruct((N, COUT, HW), out_dtype),
                   jax.ShapeDtypeStruct((N, COUT, HW), out_dtype)),
        grid_spec=pltpu.PrefetchScalarGridSpec(
            num_scalar_prefetch=0,
            grid=grid,
            in_specs=[
                pl.BlockSpec((pl.Squeezed(), KIN_PAD, col_tile),
                             lambda n, c: (n, 0, c)),
                pl.BlockSpec((COUT, KIN_PAD), lambda n, c: (0, 0)),
                pl.BlockSpec((COUT, 1), lambda n, c: (0, 0)),
                pl.BlockSpec((COUT, 1), lambda n, c: (0, 0)),
                pl.BlockSpec((COUT, 1), lambda n, c: (0, 0)),
                pl.BlockSpec(memory_space=pltpu.MemorySpace.SMEM),
            ],
            out_specs=(
                pl.BlockSpec((pl.Squeezed(), COUT, col_tile),
                             lambda n, c: (n, 0, c)),
                pl.BlockSpec((pl.Squeezed(), COUT, col_tile),
                             lambda n, c: (n, 0, c)),
            ),
        ),
        compiler_params=pltpu.CompilerParams(
            dimension_semantics=("parallel", "parallel"),
            vmem_limit_bytes=vmem_limit),
        cost_estimate=cost,
    )(xin, w_comb, b1_col, scale, shift, a_smem)

    # Free reshape (no transpose): kernel already wrote NCHW-ordered data.
    out_relu = out_relu.reshape(N, COUT, OH, OW)
    out_y = out_y.reshape(N, COUT, OH, OW)
    return out_relu, out_y


def _reference(x_nchw, y_nchw, params, *, kernel_size, padding, dilation):
    """Pure-JAX f32 reference (lax convs) for correctness checking."""
    del kernel_size
    xc = lax.conv_general_dilated(
        x_nchw, params["atrous_w"], window_strides=(1, 1),
        padding=((padding, padding), (padding, padding)),
        rhs_dilation=(dilation, dilation),
        dimension_numbers=("NCHW", "OIHW", "NCHW"))
    cat = jnp.concatenate([xc, y_nchw], axis=1)
    z = lax.conv_general_dilated(
        cat, params["conv1_w"], (1, 1), "VALID",
        dimension_numbers=("NCHW", "OIHW", "NCHW"))
    z = z + params["conv1_b"].reshape(1, -1, 1, 1)
    z = jnp.where(z > 0, z, params["prelu_a"] * z)
    g = params["bn_gamma"].reshape(1, -1, 1, 1)
    b = params["bn_beta"].reshape(1, -1, 1, 1)
    m = params["bn_mean"].reshape(1, -1, 1, 1)
    v = params["bn_var"].reshape(1, -1, 1, 1)
    bn = (z - m) / jnp.sqrt(v + params["bn_eps"]) * g + b
    return jnp.maximum(bn, 0.0), z


if __name__ == "__main__":
    # Module hyperparameters (planes must be 32 so that cat -> 64 ch matches
    # ConvBlock(2*32, 32) and bn(planes) matches the 32-channel conv output).
    N, INPLANES, H, W = 2, 4, 16, 16
    PLANES = 32
    K, PAD, DIL = 3, 2, 2

    key = jax.random.PRNGKey(0)
    k_x, k_y, k_wa, k_w1, k_b1, k_bm, k_bv = jax.random.split(key, 7)

    x = jax.random.normal(k_x, (N, INPLANES, H, W), jnp.float32)
    y_in = jax.random.normal(k_y, (N, PLANES, H, W), jnp.float32)

    # Deterministic parameter init matching _init_weight:
    #   kaiming_normal_ for both Conv2d weights, BN weight=1 / bias=0.
    fan_in_a = INPLANES * K * K
    atrous_w = (jax.random.normal(k_wa, (PLANES, INPLANES, K, K), jnp.float32)
                * jnp.sqrt(2.0 / fan_in_a))
    fan_in_1 = 2 * PLANES
    conv1_w = (jax.random.normal(k_w1, (PLANES, 2 * PLANES, 1, 1), jnp.float32)
               * jnp.sqrt(2.0 / fan_in_1))
    bound = 1.0 / jnp.sqrt(jnp.float32(fan_in_1))
    conv1_b = jax.random.uniform(k_b1, (PLANES,), jnp.float32, -bound, bound)

    params = dict(
        atrous_w=atrous_w,
        conv1_w=conv1_w,
        conv1_b=conv1_b,
        prelu_a=jnp.float32(0.25),                  # nn.PReLU() default
        bn_gamma=jnp.ones((PLANES,), jnp.float32),  # _init_weight: fill_(1)
        bn_beta=jnp.zeros((PLANES,), jnp.float32),  # _init_weight: zero_()
        # Non-trivial running stats so the inference-mode BN fold is exercised.
        bn_mean=0.1 * jax.random.normal(k_bm, (PLANES,), jnp.float32),
        bn_var=jax.random.uniform(k_bv, (PLANES,), jnp.float32, 0.5, 1.5),
        bn_eps=jnp.float32(1e-5),
        # TODO(synk): PyTorch training-mode BN uses batch statistics; this kernel
        # implements inference-mode BN with running stats only.
    )

    ref_relu, ref_y = _reference(
        x, y_in, params, kernel_size=K, padding=PAD, dilation=DIL)

    # Default (performance) path: bf16 matmul operands + bf16 outputs.
    out_relu_bf, out_y_bf = aspp_module2_forward(
        x, y_in, params, kernel_size=K, padding=PAD, dilation=DIL)
    jax.block_until_ready((out_relu_bf, out_y_bf))
    assert out_relu_bf.shape == (N, PLANES, H, W)
    assert out_y_bf.shape == (N, PLANES, H, W)
    assert out_relu_bf.dtype == jnp.bfloat16 and out_y_bf.dtype == jnp.bfloat16
    assert jnp.allclose(out_relu_bf.astype(jnp.float32), ref_relu,
                        atol=1e-1, rtol=5e-2)
    assert jnp.allclose(out_y_bf.astype(jnp.float32), ref_y,
                        atol=1e-1, rtol=5e-2)

    # Full-precision path: tight check of the fused-matmul + epilogue math.
    out_relu_f32, out_y_f32 = aspp_module2_forward(
        x, y_in, params, kernel_size=K, padding=PAD, dilation=DIL,
        compute_dtype=jnp.float32, out_dtype=jnp.float32)
    jax.block_until_ready((out_relu_f32, out_y_f32))
    assert jnp.allclose(out_relu_f32, ref_relu, atol=2e-3, rtol=2e-3)
    assert jnp.allclose(out_y_f32, ref_y, atol=2e-3, rtol=2e-3)

    print("KERNEL_OK")
</pallas_src>

<mosaic_0001>
module attributes {stable_mosaic.version = 11 : i64} {
  func.func @_aspp_fused_kernel(%arg0: i32, %arg1: i32, %arg2: memref<1x72x256xbf16, #tpu.memory_space<vmem>>, %arg3: memref<32x72xbf16, #tpu.memory_space<vmem>>, %arg4: memref<32x1xf32, #tpu.memory_space<vmem>>, %arg5: memref<32x1xf32, #tpu.memory_space<vmem>>, %arg6: memref<32x1xf32, #tpu.memory_space<vmem>>, %arg7: memref<1xf32, #tpu.memory_space<smem>>, %arg8: memref<1x32x256xbf16, #tpu.memory_space<vmem>>, %arg9: memref<1x32x256xbf16, #tpu.memory_space<vmem>>) attributes {dimension_semantics = [#tpu.dimension_semantics<parallel>, #tpu.dimension_semantics<parallel>], iteration_bounds = array<i64: 2, 1>, scalar_prefetch = 0 : i64, scratch_operands = 0 : i64, tpu.core_type = #tpu.core_type<tc>, window_params = [{transform_indices = @transform_0, window_bounds = array<i64: 1, 72, 256>}, {pipeline_mode = #tpu.pipeline_mode<synchronous>, transform_indices = @transform_1, window_bounds = array<i64: 32, 72>}, {pipeline_mode = #tpu.pipeline_mode<synchronous>, transform_indices = @transform_2, window_bounds = array<i64: 32, 1>}, {pipeline_mode = #tpu.pipeline_mode<synchronous>, transform_indices = @transform_3, window_bounds = array<i64: 32, 1>}, {pipeline_mode = #tpu.pipeline_mode<synchronous>, transform_indices = @transform_4, window_bounds = array<i64: 32, 1>}, {transform_indices = @transform_5, window_bounds = array<i64: 1>}, {transform_indices = @transform_6, window_bounds = array<i64: 1, 32, 256>}, {transform_indices = @transform_7, window_bounds = array<i64: 1, 32, 256>}]} {
    %c0 = arith.constant 0 : index
    %c0_0 = arith.constant 0 : index
    %0 = vector.load %arg3[%c0, %c0_0] : memref<32x72xbf16, #tpu.memory_space<vmem>>, vector<32x72xbf16>
    %c0_1 = arith.constant 0 : index
    %c0_2 = arith.constant 0 : index
    %c0_3 = arith.constant 0 : index
    %1 = vector.load %arg2[%c0_1, %c0_2, %c0_3] : memref<1x72x256xbf16, #tpu.memory_space<vmem>>, vector<1x72x256xbf16>
    %2 = vector.shape_cast %1 : vector<1x72x256xbf16> to vector<72x256xbf16>
    %cst = arith.constant dense<0.000000e+00> : vector<32x256xf32>
    %3 = tpu.matmul %0, %2, %cst {dimension_numbers = #tpu.dot_dimension_numbers<[1], [0], [0], [1], [0, 0, 1, 1], [], []>} : vector<32x72xbf16>, vector<72x256xbf16>, vector<32x256xf32> -> vector<32x256xf32>
    %c0_4 = arith.constant 0 : index
    %c0_5 = arith.constant 0 : index
    %4 = vector.load %arg4[%c0_4, %c0_5] : memref<32x1xf32, #tpu.memory_space<vmem>>, vector<32x1xf32>
    %5 = vector.broadcast %4 : vector<32x1xf32> to vector<32x256xf32>
    %6 = arith.addf %3, %5 : vector<32x256xf32>
    %c0_6 = arith.constant 0 : index
    %7 = memref.load %arg7[%c0_6] : memref<1xf32, #tpu.memory_space<smem>>
    %cst_7 = arith.constant 0.000000e+00 : f32
    %8 = vector.broadcast %cst_7 : f32 to vector<32x256xf32>
    %9 = arith.cmpf ogt, %6, %8 : vector<32x256xf32>
    %10 = vector.broadcast %7 : f32 to vector<32x256xf32>
    %11 = arith.mulf %6, %10 : vector<32x256xf32>
    %12 = arith.select %9, %6, %11 : vector<32x256xi1>, vector<32x256xf32>
    %13 = arith.truncf %12 : vector<32x256xf32> to vector<32x256xbf16>
    %c0_8 = arith.constant 0 : index
    %c0_9 = arith.constant 0 : index
    %c0_10 = arith.constant 0 : index
    %14 = vector.load %arg9[%c0_8, %c0_9, %c0_10] : memref<1x32x256xbf16, #tpu.memory_space<vmem>>, vector<1x32x256xbf16>
    %15 = vector.shape_cast %14 : vector<1x32x256xbf16> to vector<32x256xbf16>
    %16 = vector.shape_cast %13 : vector<32x256xbf16> to vector<1x32x256xbf16>
    tpu.vector_store %arg9[%c0_8, %c0_9, %c0_10], %16 {strides = array<i32>} : memref<1x32x256xbf16, #tpu.memory_space<vmem>>, vector<1x32x256xbf16>,
    %c0_11 = arith.constant 0 : index
    %c0_12 = arith.constant 0 : index
    %17 = vector.load %arg5[%c0_11, %c0_12] : memref<32x1xf32, #tpu.memory_space<vmem>>, vector<32x1xf32>
    %18 = vector.broadcast %17 : vector<32x1xf32> to vector<32x256xf32>
    %19 = arith.mulf %12, %18 : vector<32x256xf32>
    %c0_13 = arith.constant 0 : index
    %c0_14 = arith.constant 0 : index
    %20 = vector.load %arg6[%c0_13, %c0_14] : memref<32x1xf32, #tpu.memory_space<vmem>>, vector<32x1xf32>
    %21 = vector.broadcast %20 : vector<32x1xf32> to vector<32x256xf32>
    %22 = arith.addf %19, %21 : vector<32x256xf32>
    %cst_15 = arith.constant 0.000000e+00 : f32
    %23 = vector.broadcast %cst_15 : f32 to vector<32x256xf32>
    %24 = arith.maximumf %22, %23 : vector<32x256xf32>
    %25 = arith.truncf %24 : vector<32x256xf32> to vector<32x256xbf16>
    %c0_16 = arith.constant 0 : index
    %c0_17 = arith.constant 0 : index
    %c0_18 = arith.constant 0 : index
    %26 = vector.load %arg8[%c0_16, %c0_17, %c0_18] : memref<1x32x256xbf16, #tpu.memory_space<vmem>>, vector<1x32x256xbf16>
    %27 = vector.shape_cast %26 : vector<1x32x256xbf16> to vector<32x256xbf16>
    %28 = vector.shape_cast %25 : vector<32x256xbf16> to vector<1x32x256xbf16>
    tpu.vector_store %arg8[%c0_16, %c0_17, %c0_18], %28 {strides = array<i32>} : memref<1x32x256xbf16, #tpu.memory_space<vmem>>, vector<1x32x256xbf16>,
    return
  }
  func.func @transform_0(%arg0: i32, %arg1: i32) -> (i32, i32, i32) {
    %c0_i32 = arith.constant 0 : i32
    %c0_i32_0 = arith.constant 0 : i32
    return %arg0, %c0_i32, %arg1 : i32, i32, i32
  }
  func.func @transform_1(%arg0: i32, %arg1: i32) -> (i32, i32) {
    %c0_i32 = arith.constant 0 : i32
    %c0_i32_0 = arith.constant 0 : i32
    %c0_i32_1 = arith.constant 0 : i32
    return %c0_i32, %c0_i32_0 : i32, i32
  }
  func.func @transform_2(%arg0: i32, %arg1: i32) -> (i32, i32) {
    %c0_i32 = arith.constant 0 : i32
    %c0_i32_0 = arith.constant 0 : i32
    %c0_i32_1 = arith.constant 0 : i32
    return %c0_i32, %c0_i32_0 : i32, i32
  }
  func.func @transform_3(%arg0: i32, %arg1: i32) -> (i32, i32) {
    %c0_i32 = arith.constant 0 : i32
    %c0_i32_0 = arith.constant 0 : i32
    %c0_i32_1 = arith.constant 0 : i32
    return %c0_i32, %c0_i32_0 : i32, i32
  }
  func.func @transform_4(%arg0: i32, %arg1: i32) -> (i32, i32) {
    %c0_i32 = arith.constant 0 : i32
    %c0_i32_0 = arith.constant 0 : i32
    %c0_i32_1 = arith.constant 0 : i32
    return %c0_i32, %c0_i32_0 : i32, i32
  }
  func.func @transform_5(%arg0: i32, %arg1: i32) -> i32 {
    %c0_i32 = arith.constant 0 : i32
    %c0_i32_0 = arith.constant 0 : i32
    return %c0_i32 : i32
  }
  func.func @transform_6(%arg0: i32, %arg1: i32) -> (i32, i32, i32) {
    %c0_i32 = arith.constant 0 : i32
    %c0_i32_0 = arith.constant 0 : i32
    return %arg0, %c0_i32, %arg1 : i32, i32, i32
  }
  func.func @transform_7(%arg0: i32, %arg1: i32) -> (i32, i32, i32) {
    %c0_i32 = arith.constant 0 : i32
    %c0_i32_0 = arith.constant 0 : i32
    return %arg0, %c0_i32, %arg1 : i32, i32, i32
  }
}

</mosaic_0001>

<bundles_post_ra>
// kernel: tpu_custom_call.1
= control target key start
LH: loop header
LB: loop body
LE: loop exit
PB: predicated region body
PF: predicated region fallthrough
CT: control target
= control target key end

     0   :  { %s1468_s0 = inlined_call_operand.hbm [shape: bf16[2,72,256], index: 0, kind: input, shape index: {}]   ;;  %s1469_s1 = inlined_call_operand.vmem [shape: bf16[32,72], index: 1, kind: input, shape index: {}]   ;;  %s1470_s2 = inlined_call_operand.vmem [shape: f32[32,1], index: 2, kind: input, shape index: {}]   ;;  %s1471_s3 = inlined_call_operand.vmem [shape: f32[32,1], index: 3, kind: input, shape index: {}]   ;;  %s1472_s4 = inlined_call_operand.vmem [shape: f32[32,1], index: 4, kind: input, shape index: {}]   ;;  %s1473_s5 = inlined_call_operand.<no memory space> [shape: f32[1], index: 5, kind: input, shape index: {}]   ;;  %s1474_s6 = inlined_call_operand.hbm [shape: bf16[2,32,256], index: 6, kind: output, shape index: {0}]   ;;  %s1475_s7 = inlined_call_operand.hbm [shape: bf16[2,32,256], index: 7, kind: output, shape index: {1}]  }
   0x1   :  { %13 = sst [smem:[#allocation2]] %s1473_s5 }
   0x2   :  { %14 = vsyncpa [#allocation4], 0 }
   0x3   :  { %16 = vsyncpa [#allocation4 + $0x1], 0 }
   0x4   :  { %17 = vsyncpa [#allocation5], 0 }
   0x5   :  { %19 = vsyncpa [#allocation5 + $0x1], 0 }
   0x6   :  { %20 = vsyncpa [#allocation8], 0 }
   0x7   :  { %22 = vsyncpa [#allocation8 + $0x1], 0  ;;  %s1156_s26 = smov 0   ;;  %s1158_s27 = smov 0  }
   0x8   :  { %s1160_s28 = smov 0   ;;  %s1162_s29 = smov 0  }
   0x9   :  { %s1164_s30 = smov 0   ;;  %s1166_s8 = smov 0  }
   0xa LB: > { %s807_s5 = sadd.s32 4294967295, %s1103_s8   ;;  %s808_s9 = sadd.s32 4294967294, %s1103_s8   ;;  %s1103_s8 = sphi %s1166_s8, %s28_s8   ;;  %s1099_s30 = sphi %s1164_s30, %s1491_s30   ;;  %s1095_s29 = sphi %s1162_s29, %s1490_s29   ;;  %s1091_s28 = sphi %s1160_s28, %s1489_s28   ;;  %s1087_s27 = sphi %s1158_s27, %s1488_s27   ;;  %s1083_s26 = sphi %s1156_s26, %s1487_s26  }
   0xb   : > { %s40_s10 = sadd.s32 1, %s1099_s30  ;;  %s49_s11 = sadd.s32 1, %s1091_s28 }
   0xc   : > { %p42_p0 = scmp.ge.s32.totalorder %s40_s10, 2  ;;  %p56_p1 = scmp.ne.s32.totalorder %s1091_s28, %s1087_s27 }
   0xd   : > { %p57_p2 = scmp.eq.s32.totalorder %s1103_s8, 0  ;;  %p62_p3 = scmp.ne.s32.totalorder %s1087_s27, %s1083_s26 }
   0xe   : > { %s1493_s10 = smov (%p42_p0, %s40_s10), 0  ;;  %p63_p5 = scmp.eq.s32.totalorder %s807_s5, 0 }
   0xf   : > { %p1197_p4 = por %p57_p2, %p56_p1  ;;  %s44_s13 = ssub.s32 %s1099_s30, %s1493_s10 }
  0x10   : > { %p193_p6 = scmp.eq.s32.totalorder %s807_s5, 1  ;;  %p47_p7 = scmp.eq.s32.totalorder %s44_s13, 0 }
  0x11   : > { %p1203_p8 = por %p63_p5, %p62_p3  ;;  %p199_p10 = scmp.eq.s32.totalorder %s808_s9, 1 }
  0x12   : > { %p1207_p9 = por %p193_p6, %p56_p1  ;;  %p886_p13 = scmp.lt.s32.totalorder %s1103_s8, 2 }
  0x13   : > { %s1212_s16 = scalar_select %p47_p7, %s1091_s28, %s49_s11  }
  0x14   : > { %s1479_s15 = scalar_select %p1207_p9, 1, 0 }
  0x15   : > { %p1214_p11 = por %p199_p10, %p62_p3  ;;  %s262_s18 = sand.u32 1, %s1091_s28  }
  0x16   : > { %s866_s19 = smul.u32 72, %s262_s18  ;;  %p1224_p0 = pnand %p886_p13, %p1197_p4 }
  0x17   : > { %s1480_s17 = scalar_select %p1214_p11, 1, 0 }
  0x18   : > { %s867_s20 = smul.u32 1152, %s1099_s30  ;;  %s266_s25 = scalar_lea.vmem [#allocation3], %s866_s19 }
  0x19   : > { %s275_s5 = sshll.u32 %s266_s25, 4  ;;  %s1236_s9 = scalar_lea.sflag [#allocation4], %s262_s18  ;;  %s1233_s5 = int_to_ptr.vmem [resolvable:$true] %s275_s5 }
  0x1a   : > { %s1231_s24 = scalar_lea.hbm %s1468_s0, %s867_s20  ;;  %p961_p3 = pneg %p1224_p0 }
  0x1b   : > { %s959_s11 = scalar_lea.hbm %s1231_s24, 1152  ;;  %s964_s20 = scalar_lea.hbm %s1468_s0, 2304 }
  0x1c   : > { %p960_p2 = scmp.ne.s32.totalorder %s1231_s24, %s959_s11  ;;  %p965_p6 = scmp.lt.u32.totalorder %s1231_s24, %s1468_s0 }
  0x1d   : > { %p966_p7 = scmp.lt.u32.totalorder %s964_s20, %s959_s11  ;;  %p968_p13 = scmp.lt.u32.totalorder %s959_s11, %s1231_s24 }
  0x1e   : > { %p962_p4 = pnand %p961_p3, %p960_p2 }
  0x1f   : > { %p967_p10 = por %p966_p7, %p965_p6 }
  0x20   : > { %p963_p5 = pneg %p962_p4 }
  0x21   : > { %p969_p12 = por %p968_p13, %p967_p10 }
  0x23   : > { %p970_p1 = pnand %p969_p12, %p963_p5 }
  0x25   : > { %973 = shalt.err (!%p970_p1)
}
  0x26   : > { %s974_s18 = scalar_lea.vmem %s1233_s5, 1152  ;;  %s1105_s23 = smov [#allocation3]  }
  0x27   : > { %p975_p2 = scmp.ne.s32.totalorder %s1233_s5, %s974_s18  ;;  %s979_s25 = sshll.u32 %s1105_s23, 4  ;;  %s980_s25 = int_to_ptr.vmem [resolvable:$false] %s979_s25 }
  0x28   : > { %s981_s12 = scalar_lea.vmem %s980_s25, 2304  ;;  %p982_p9 = scmp.lt.s32.totalorder %s1233_s5, %s980_s25 }
  0x29   : > { %p977_p4 = pnand %p975_p2, %p961_p3  ;;  %p983_p6 = scmp.lt.s32.totalorder %s981_s12, %s974_s18 }
  0x2b   : > { %p978_p11 = pneg %p977_p4  ;;  %p984_p7 = por %p983_p6, %p982_p9 }
  0x2d   : > { %p985_p10 = pnand %p984_p7, %p978_p11 }
  0x2f   : > { %988 = shalt.err (!%p985_p10)
}
  0x30   : > { %s1106_s11 = smov 128   ;;  %s1107_s13 = smov 8  }
  0x31   : > { %878 = dma.hbm_to_vmem [thread:$0]  (!%p1224_p0), %s1231_s24, 1152, %s1233_s5, %s1236_s9, %s1106_s11, %s1106_s11, %s1107_s13  }
  0x32   : > { %p283_p12 = scmp.lt.s32.totalorder %s1103_s8, 3  ;;  %p1482_p1 = scmp.ge.s32.totalorder %s1103_s8, 1 }
  0x34   : > { %p284_p3 = pnand %p1482_p1, %p283_p12 }
  0x35   : > { %s1268_s20 = sand.u32 (!%p284_p3), 1, %s1087_s27  }
  0x36   : > { %287 = sbr.rel (%p284_p3) target bundleno = 354 (0x162), region = 44  ;;  %s290_s19 = scalar_lea.sflag (!%p284_p3), [#allocation4], %s1268_s20 }
  0x37   : > { %s868_s22 = smul.u32 (!%p284_p3), 72, %s1268_s20 }
  0x39   : > { %s1272_s18 = scalar_lea.vmem (!%p284_p3), [#allocation3], %s868_s22 }
  0x3d   : > { %1070 = dma.done.wait (%p1203_p8), %s290_s19, 1152  }
  0x3e   : > { %1072 = vsyncadd (%p1203_p8), %s290_s19, 4294966144  ;;  %v1108_v0 = vmov 0   ;;  %v943_v1 = vld [vmem:[%s1272_s18 + $0x4] ss:$8 sps:$4 sm:$0xff]   ;;  %v945_v2 = vld [vmem:[%s1272_s18] ss:$8 sps:$4 sm:$0xff]  }
  0x3f   : > { %471 = vmatprep.mubr.bf16.mxu0 %v1108_v0  ;;  %481 = vmatprep.mubr.bf16.mxu1 %v1108_v0  ;;  %v946_v3 = vld [vmem:[%s1272_s18 + $0x14] ss:$8 sps:$4 sm:$0xff]   ;;  %v948_v4 = vld [vmem:[%s1272_s18 + $0x10] ss:$8 sps:$4 sm:$0xff]   ;;  %v949_v5 = vld [vmem:[%s1272_s18 + $0x24] ss:$8 sps:$4 sm:$0xff]  }
  0x40   : > { %942 = vset.pattern.permute.xlu1 %v1108_v0  ;;  %941 = vset.pattern.permute.xlu0 %v1108_v0  ;;  %v951_v6 = vld [vmem:[%s1272_s18 + $0x20] ss:$8 sps:$4 sm:$0xff]   ;;  %v952_v8 = vld [vmem:[%s1272_s18 + $0x34] ss:$8 sps:$4 sm:$0xff]   ;;  %v954_v13 = vld [vmem:[%s1272_s18 + $0x30] ss:$8 sps:$4 sm:$0xff]  }
  0x41   : > { %439 = vmatprep.subr.bf16.mxu0 %v943_v1  ;;  %856 = vmatprep.subr.bf16.mxu1 %v943_v1  ;;  %v348_v7 = vld [vmem:[%s1470_s2 + $0x10] sm:$0xff]  ;;  %v346_v9 = vld [vmem:[%s1470_s2] sm:$0xff]  ;;  %v349_v11 = vld [vmem:[%s1470_s2 + $0x18] sm:$0xff]  ;;  %vm432_vm0 = vcmask 1043456   ;;  %vm425_vm1 = vcmask 588800   ;;  %s492_s24 = sld [smem:[#allocation2]] }
  0x42   : > { %440 = vmatpush1.bf16.msra.mxu0 %v945_v2  ;;  %861 = vmatpush1.bf16.msra.mxu1 %v945_v2  ;;  %v345_v10 = vld [vmem:[%s1272_s18 + $0x40] sm:$0xff]  ;;  %v549_v21 = vld [vmem:[%s1471_s3 + $0x18] sm:$0xff]  ;;  %v548_v22 = vld [vmem:[%s1471_s3 + $0x10] sm:$0xff]  ;;  %s813_s5 = sshll.u32 %s1268_s20, 5  ;;  %s854_s25 = sshll.u32 %s1095_s29, 9 }
  0x43   : > { %441 = vmatprep.subr.bf16.mxu0 %v946_v3  ;;  %857 = vmatprep.subr.bf16.mxu1 %v946_v3  ;;  %v347_v12 = vld [vmem:[%s1470_s2 + $0x8] sm:$0xff]  ;;  %v826_v14 = vcombine.high %v345_v10, %v345_v10  ;;  %v825_v15 = vcombine.low %v345_v10, %v345_v10  ;;  %v546_v17 = vld [vmem:[%s1471_s3] sm:$0xff]  ;;  %v581_v25 = vld [vmem:[%s1472_s4 + $0x18] sm:$0xff]  ;;  %s1346_s9 = scalar_lea.vmem [#allocation7], %s813_s5  ;;  %s1360_s12 = scalar_lea.vmem [#allocation6], %s813_s5 }
  0x44   : > { %362 = vperm.xlu1 %942, %v348_v7   ;;  %352 = vperm.xlu0 %941, %v346_v9   ;;  %v547_v16 = vld [vmem:[%s1471_s3 + $0x8] sm:$0xff]  ;;  %v957_v19 = vld [vmem:[%s1469_s1] sm:$0xff]   ;;  %v580_v26 = vld [vmem:[%s1472_s4 + $0x10] sm:$0xff]  ;;  %s685_s23 = sshll.u32 %s1346_s9, 4  ;;  %s1374_s22 = scalar_lea.hbm %s1475_s7, %s854_s25  ;;  %s1363_s23 = int_to_ptr.vmem [resolvable:$true] %s685_s23 }
  0x45   : > { %v434_v18 = vsel %vm432_vm0, %v825_v15, 0  ;;  %v958_v20 = vld [vmem:[%s1469_s1 + $0x8] sm:$0xff]   ;;  %v578_v24 = vld [vmem:[%s1472_s4] sm:$0xff]  ;;  %s652_s18 = scalar_lea.sflag [#allocation8], %s1268_s20  ;;  %s989_s14 = scalar_lea.vmem %s1363_s23, 512 }
  0x46   : > { %442 = vmatpush1.bf16.msra.mxu0 %v948_v4  ;;  %862 = vmatpush1.bf16.msra.mxu1 %v948_v4  ;;  %v579_v23 = vld [vmem:[%s1472_s4 + $0x8] sm:$0xff]  ;;  %p990_p8 = scmp.ne.s32.totalorder %s1363_s23, %s989_s14  ;;  %p1483_p9 = scmp.ne.s32.totalorder %s1479_s15, 0 }
  0x47   : > { %443 = vmatprep.subr.bf16.mxu0 %v949_v5  ;;  %858 = vmatprep.subr.bf16.mxu1 %v949_v5  ;;  %v1335_v37 = vstv %s492_s24  ;;  %s1109_s21 = smov [#allocation7]  }
  0x48   : > { %367 = vperm.xlu1 %942, %v349_v11   ;;  %357 = vperm.xlu0 %941, %v347_v12   ;;  %p991_p11 = pnand %p990_p8, %p1483_p9  ;;  %s993_s24 = sshll.u32 %s1109_s21, 4  ;;  %s994_s24 = int_to_ptr.vmem [resolvable:$false] %s993_s24 }
  0x49   : > { %s995_s5 = scalar_lea.vmem %s994_s24, 1024  ;;  %p996_p5 = scmp.lt.s32.totalorder %s1363_s23, %s994_s24 }
  0x4a   : > { %444 = vmatpush1.bf16.msra.mxu0 %v951_v6  ;;  %863 = vmatpush1.bf16.msra.mxu1 %v951_v6  ;;  %p992_p0 = pneg %p991_p11  ;;  %p997_p13 = scmp.lt.s32.totalorder %s995_s5, %s989_s14 }
  0x4b   : > { %445 = vmatprep.subr.bf16.mxu0 %v952_v8  ;;  %859 = vmatprep.subr.bf16.mxu1 %v952_v8 }
  0x4c   : > { %557 = vperm.xlu1 %942, %v547_v16   ;;  %552 = vperm.xlu0 %941, %v546_v17   ;;  %p998_p2 = por %p997_p13, %p996_p5 }
  0x4e   : > { %446 = vmatpush1.bf16.msra.mxu0 %v954_v13  ;;  %864 = vmatpush1.bf16.msra.mxu1 %v954_v13  ;;  %p999_p4 = pnand %p998_p2, %p992_p0 }
  0x4f   : > { %827 = vmatprep.subr.msk.bf16.mxu0 %vm432_vm0, %v826_v14  ;;  %860 = vmatprep.subr.msk.bf16.mxu1 %vm432_vm0, %v826_v14 }
  0x50   : > { %567 = vperm.xlu1 %942, %v549_v21   ;;  %562 = vperm.xlu0 %941, %v548_v22  }
  0x52   : > { %448 = vmatpush1.bf16.msra.mxu0 %v434_v18  ;;  %865 = vmatpush1.bf16.msra.mxu1 %v434_v18 }
  0x54   : > { %589 = vperm.xlu1 %942, %v579_v23   ;;  %584 = vperm.xlu0 %941, %v578_v24  }
  0x55   : > { %828 = vmatmul.mubr.msk.bf16.vlgmr.msra.gmra.mrb[0].mxu0 %vm425_vm1, %v957_v19  ;;  %829 = vmatmul.mubr.msk.bf16.vlgmr.msra.gmra.mrb[0].mxu1 %vm425_vm1, %v958_v20 }
  0x58   : > { %599 = vperm.xlu1 %942, %v581_v25   ;;  %594 = vperm.xlu0 %941, %v580_v26  }
  0xc3   : > { %v353_v27 = vpop.permute.xlu0 %352  ;;  %v363_v28 = vpop.permute.xlu1 %362 }
  0xc7   : > { %v358_v29 = vpop.permute.xlu0 %357  ;;  %v1329_v30 = vpop.permute.xlu1 %367 }
  0xcb   : > { %v553_v31 = vpop.permute.xlu0 %552  ;;  %v1331_v32 = vpop.permute.xlu1 %557 }
  0xcf   : > { %v563_v33 = vpop.permute.xlu0 %562  ;;  %v1333_v34 = vpop.permute.xlu1 %567 }
  0xd3   : > { %v585_v35 = vpop.permute.xlu0 %584  ;;  %v590_v2 = vpop.permute.xlu1 %589 }
  0xd7   : > { %v595_v61 = vpop.permute.xlu0 %594  ;;  %v600_v23 = vpop.permute.xlu1 %599 }
 0x128   : > { %v473_v36 = vpop.f32.mrb[0].mxu0  ;;  %v483_v38 = vpop.f32.mrb[0].mxu1 }
 0x129   : > { %v474_v39 = vadd.f32 %v473_v36, %v353_v27  ;;  %v484_v40 = vadd.f32 %v483_v38, %v363_v28  ;;  %v475_v41 = vpop.f32.mrb[1].mxu0  ;;  %v485_v42 = vpop.f32.mrb[1].mxu1 }
 0x12a   : > { %v476_v43 = vadd.f32 %v475_v41, %v353_v27  ;;  %v486_v44 = vadd.f32 %v485_v42, %v363_v28  ;;  %v477_v45 = vpop.f32.mrb[2].mxu0  ;;  %v487_v46 = vpop.f32.mrb[2].mxu1 }
 0x12b   : > { %vm493_vm2 = vcmp.gt.f32.partialorder %v474_v39, 0.0  ;;  %v502_v47 = vmul.f32 %v1335_v37, %v474_v39  ;;  %vm497_vm3 = vcmp.gt.f32.partialorder %v484_v40, 0.0  ;;  %v506_v48 = vmul.f32 %v1335_v37, %v484_v40  ;;  %v479_v49 = vpop.f32.mrb[3].mxu0  ;;  %v489_v50 = vpop.f32.mrb[3].mxu1 }
 0x12c   : > { %vm494_vm4 = vcmp.gt.f32.partialorder %v476_v43, 0.0  ;;  %v503_v51 = vmul.f32 %v1335_v37, %v476_v43  ;;  %vm498_vm5 = vcmp.gt.f32.partialorder %v486_v44, 0.0  ;;  %v507_v52 = vmul.f32 %v1335_v37, %v486_v44 }
 0x12d   : > { %v510_v53 = vsel %vm493_vm2, %v474_v39, %v502_v47  ;;  %v514_v54 = vsel %vm497_vm3, %v484_v40, %v506_v48  ;;  %v478_v55 = vadd.f32 %v477_v45, %v358_v29  ;;  %v488_v56 = vadd.f32 %v487_v46, %v1329_v30 }
 0x12e   : > { %v570_v57 = vmul.f32 %v553_v31, %v510_v53  ;;  %v574_v58 = vmul.f32 %v563_v33, %v514_v54  ;;  %v511_v59 = vsel %vm494_vm4, %v476_v43, %v503_v51  ;;  %v515_v60 = vsel %vm498_vm5, %v486_v44, %v507_v52 }
 0x12f   : > { %v846_v62 = vpack.c.bf16 %v511_v59, %v510_v53  ;;  %v571_v63 = vmul.f32 %v553_v31, %v511_v59  ;;  %v848_v0 = vpack.c.bf16 %v515_v60, %v514_v54  ;;  %v575_v1 = vmul.f32 %v563_v33, %v515_v60 }
 0x130   : > { %v602_v3 = vadd.f32 %v585_v35, %v570_v57  ;;  %v606_v4 = vadd.f32 %v595_v61, %v574_v58  ;;  %vm495_vm6 = vcmp.gt.f32.partialorder %v478_v55, 0.0  ;;  %v504_v5 = vmul.f32 %v1335_v37, %v478_v55 }
 0x131   : > { %542 = vst [vmem:[%s1346_s9] sm:$0xff] %v846_v62  ;;  %v603_v6 = vadd.f32 %v585_v35, %v571_v63  ;;  %544 = vst [vmem:[%s1346_s9 + $0x10] sm:$0xff] %v848_v0  ;;  %v607_v7 = vadd.f32 %v595_v61, %v575_v1  ;;  %vm499_vm7 = vcmp.gt.f32.partialorder %v488_v56, 0.0  ;;  %v508_v8 = vmul.f32 %v1335_v37, %v488_v56 }
 0x132   : > { %v610_v9 = vmax.f32 %v602_v3, 0.0  ;;  %v614_v10 = vmax.f32 %v606_v4, 0.0  ;;  %v512_v11 = vsel %vm495_vm6, %v478_v55, %v504_v5  ;;  %v480_v12 = vadd.f32 %v479_v49, %v358_v29 }
 0x133   : > { %v611_v13 = vmax.f32 %v603_v6, 0.0  ;;  %v615_v14 = vmax.f32 %v607_v7, 0.0  ;;  %v572_v15 = vmul.f32 %v1331_v32, %v512_v11  ;;  %v516_v16 = vsel %vm499_vm7, %v488_v56, %v508_v8 }
 0x134   : > { %v576_v17 = vmul.f32 %v1333_v34, %v516_v16  ;;  %vm496_vm8 = vcmp.gt.f32.partialorder %v480_v12, 0.0  ;;  %v505_v18 = vmul.f32 %v1335_v37, %v480_v12  ;;  %v490_v19 = vadd.f32 %v489_v50, %v1329_v30 }
 0x135   : > { %v850_v20 = vpack.c.bf16 %v611_v13, %v610_v9  ;;  %v852_v21 = vpack.c.bf16 %v615_v14, %v614_v10  ;;  %v604_v22 = vadd.f32 %v590_v2, %v572_v15 }
 0x136   : > { %v513_v24 = vsel %vm496_vm8, %v480_v12, %v505_v18  ;;  %vm500_vm9 = vcmp.gt.f32.partialorder %v490_v19, 0.0  ;;  %v509_v25 = vmul.f32 %v1335_v37, %v490_v19  ;;  %v608_v26 = vadd.f32 %v600_v23, %v576_v17 }
 0x137   : > { %642 = vst [vmem:[%s1360_s12] sm:$0xff] %v850_v20  ;;  %644 = vst [vmem:[%s1360_s12 + $0x10] sm:$0xff] %v852_v21  ;;  %v847_v27 = vpack.c.bf16 %v513_v24, %v512_v11  ;;  %v573_v28 = vmul.f32 %v1331_v32, %v513_v24  ;;  %v612_v30 = vmax.f32 %v604_v22, 0.0 }
 0x138   : > { %v517_v29 = vsel %vm500_vm9, %v490_v19, %v509_v25  ;;  %v616_v36 = vmax.f32 %v608_v26, 0.0 }
 0x139   : > { %543 = vst [vmem:[%s1346_s9 + $0x8] sm:$0xff] %v847_v27  ;;  %v605_v31 = vadd.f32 %v590_v2, %v573_v28  ;;  %v849_v33 = vpack.c.bf16 %v517_v29, %v516_v16  ;;  %v577_v35 = vmul.f32 %v1333_v34, %v517_v29 }
 0x13b   : > { %v613_v37 = vmax.f32 %v605_v31, 0.0  ;;  %545 = vst [vmem:[%s1346_s9 + $0x18] sm:$0xff] %v849_v33  ;;  %v609_v38 = vadd.f32 %v600_v23, %v577_v35 }
 0x13c   : > { %1002 = shalt.err (!%p999_p4)
}
 0x13d   : > { %s1003_s9 = scalar_lea.hbm %s1374_s22, 512  ;;  %s1007_s21 = scalar_lea.hbm %s1475_s7, 1024 }
 0x13e   : > { %p1004_p6 = scmp.ne.s32.totalorder %s1374_s22, %s1003_s9  ;;  %p1008_p12 = scmp.lt.u32.totalorder %s1374_s22, %s1475_s7 }
 0x13f   : > { %p1009_p1 = scmp.lt.u32.totalorder %s1007_s21, %s1003_s9  ;;  %p1011_p8 = scmp.lt.u32.totalorder %s1003_s9, %s1374_s22 }
 0x140   : > { %p1005_p7 = pnand %p1004_p6, %p1483_p9 }
 0x141   : > { %p1010_p3 = por %p1009_p1, %p1008_p12 }
 0x142   : > { %p1006_p10 = pneg %p1005_p7 }
 0x143   : > { %p1012_p11 = por %p1011_p8, %p1010_p3 }
 0x145   : > { %p1013_p0 = pnand %p1012_p11, %p1006_p10 }
 0x147   : > { %1016 = shalt.err (!%p1013_p0)
}
 0x148   : > { %s1110_s14 = smov 128   ;;  %s1111_s5 = smov 8   ;;  %v851_v32 = vpack.c.bf16 %v613_v37, %v612_v30  ;;  %v617_v34 = vmax.f32 %v609_v38, 0.0 }
 0x149   : > { %872 = dma.vmem_to_hbm [thread:$0]  (%p1483_p9), %s1363_s23, 512, %s1374_s22, %s652_s18, %s1110_s14, %s1110_s14, %s1111_s5  }
 0x14a   : > { %643 = vst [vmem:[%s1360_s12 + $0x8] sm:$0xff] %v851_v32  ;;  %v853_v39 = vpack.c.bf16 %v617_v34, %v616_v36  ;;  %s1411_s11 = scalar_lea.hbm %s1474_s6, %s854_s25  ;;  %s1484_s13 = sshll.u32 %s1360_s12, 4  ;;  %s1415_s13 = int_to_ptr.vmem [resolvable:$true] %s1484_s13 }
 0x14b   : > { %s647_s21 = scalar_lea.sflag [#allocation5], %s1268_s20  ;;  %s1017_s24 = scalar_lea.vmem %s1415_s13, 512 }
 0x14c   : > { %645 = vst [vmem:[%s1360_s12 + $0x18] sm:$0xff] %v853_v39  ;;  %p1018_p5 = scmp.ne.s32.totalorder %s1415_s13, %s1017_s24  ;;  %s1112_s23 = smov [#allocation6]  }
 0x14d   : > { %s1021_s29 = sshll.u32 %s1112_s23, 4  ;;  %s1022_s29 = int_to_ptr.vmem [resolvable:$false] %s1021_s29 }
 0x14e   : > { %p1019_p13 = pnand %p1018_p5, %p1483_p9  ;;  %s1023_s22 = scalar_lea.vmem %s1022_s29, 1024 }
 0x14f   : > { %p1024_p4 = scmp.lt.s32.totalorder %s1415_s13, %s1022_s29  ;;  %p1025_p6 = scmp.lt.s32.totalorder %s1023_s22, %s1017_s24 }
 0x150   : > { %p1020_p2 = pneg %p1019_p13 }
 0x151   : > { %p1026_p7 = por %p1025_p6, %p1024_p4 }
 0x153   : > { %p1027_p10 = pnand %p1026_p7, %p1020_p2 }
 0x155   : > { %1030 = shalt.err (!%p1027_p10)
}
 0x156   : > { %s1031_s25 = scalar_lea.hbm %s1411_s11, 512  ;;  %s1035_s19 = scalar_lea.hbm %s1474_s6, 1024 }
 0x157   : > { %p1032_p12 = scmp.ne.s32.totalorder %s1411_s11, %s1031_s25  ;;  %p1036_p8 = scmp.lt.u32.totalorder %s1411_s11, %s1474_s6 }
 0x158   : > { %p1037_p11 = scmp.lt.u32.totalorder %s1035_s19, %s1031_s25  ;;  %p1039_p5 = scmp.lt.u32.totalorder %s1031_s25, %s1411_s11 }
 0x159   : > { %p1033_p1 = pnand %p1032_p12, %p1483_p9 }
 0x15a   : > { %p1038_p0 = por %p1037_p11, %p1036_p8 }
 0x15b   : > { %p1034_p3 = pneg %p1033_p1 }
 0x15c   : > { %p1040_p13 = por %p1039_p5, %p1038_p0 }
 0x15e   : > { %p1041_p2 = pnand %p1040_p13, %p1034_p3 }
 0x160   : > { %1044 = shalt.err (!%p1041_p2)
}
 0x161   : > { %871 = dma.vmem_to_hbm [thread:$0]  (%p1483_p9), %s1415_s13, 512, %s1411_s11, %s647_s21, %s1110_s14, %s1110_s14, %s1111_s5  }
 0x162 PF: > { %s700_s24 = sand.u32 1, %s1083_s26   ;;  %p1485_p4 = scmp.ne.s32.totalorder %s1480_s17, 0 }
 0x163   : > { %p1486_p6 = scmp.ge.s32.totalorder %s1103_s8, 2  ;;  %s701_s29 = scalar_lea.sflag [#allocation5], %s700_s24 }
 0x165   : > { %p880_p7 = pnand %p1486_p6, %p1485_p4 }
 0x167   : > { %1074 = dma.done.wait (!%p880_p7), %s701_s29, 512  }
 0x168   : > { %1076 = vsyncadd (!%p880_p7), %s701_s29, 4294966784  ;;  %s710_s15 = scalar_lea.sflag [#allocation8], %s700_s24 }
 0x169   : > { %1078 = dma.done.wait (!%p880_p7), %s710_s15, 512  }
 0x16a   : > { %1080 = vsyncadd (!%p880_p7), %s710_s15, 4294966784  ;;  %s28_s8 = sadd.s32 1, %s1103_s8   ;;  %s1487_s26 = smov %s1087_s27 }
 0x16b   : > { %p25_p10 = scmp.ge.s32.totalorder %s28_s8, 4   ;;  %s1488_s27 = smov %s1091_s28 }
 0x16c   : > { %s1489_s28 = smov %s1212_s16  ;;  %s1490_s29 = smov %s1099_s30 }
 0x16d   : > { %s1491_s30 = smov %s1493_s10  ;;  %27 = sbr.rel (!%p25_p10) target bundleno = 10 (0xa), region = 106 }
 0x174   :  { %715 = vsyncpa [#allocation4], 1 }
 0x175   :  { %717 = vsyncpa [#allocation4 + $0x1], 1 }
 0x176   :  { %718 = vsyncpa [#allocation5], 1 }
 0x177   :  { %720 = vsyncpa [#allocation5 + $0x1], 1 }
 0x178   :  { %721 = vsyncpa [#allocation8], 1 }
 0x179   :  { %723 = vsyncpa [#allocation8 + $0x1], 1 }

</bundles_post_ra>
